<compile_context>
chip_gen: v7x
topology: tpu7x:2x2x1
jax: 0.10.0
libtpu: 0.0.40
codegen_flags: <defaults>
</compile_context>

<pallas_src>
import functools

import jax
import jax.numpy as jnp
from jax.experimental import pallas as pl
from jax.experimental.pallas import tpu as pltpu

_LANES = 128
_SUBLANES = 8


def _round_up(x, m):
    return ((x + m - 1) // m) * m


def _cdiv(a, b):
    return -(-a // b)


def _policy_kernel(x_ref, w1_ref, w2_ref, bias_ref, o_ref, *, hidden_pad, num_actions):
    # bias_ref layout: [ b1 (hidden_pad lanes, zero-padded) | b2 (a_pad lanes) ]
    # Layer 1: relu(x @ W1 + b1).  MXU fed bf16, accumulation in f32.
    x = x_ref[...].astype(jnp.bfloat16)
    h = jnp.dot(x, w1_ref[...], preferred_element_type=jnp.float32)
    h = jnp.maximum(h + bias_ref[:, :hidden_pad], 0.0)

    # Layer 2 logits: h @ W2 + b2.  Action dim padded to 128 lanes; padded
    # columns have zero weights and -1e30 bias so they vanish from the softmax.
    logits = jnp.dot(h.astype(jnp.bfloat16), w2_ref[...],
                     preferred_element_type=jnp.float32)
    logits = logits + bias_ref[:, hidden_pad:]

    # Numerically stable softmax over the action axis (all f32, exact divide so
    # each row sums to 1 at f32 precision for downstream sampling).
    m = jnp.max(logits, axis=-1, keepdims=True)
    e = jnp.exp(logits - m)
    denom = jnp.sum(e, axis=-1, keepdims=True)
    probs = e / denom

    # Narrow writeback: only the real action columns go back to HBM.
    o_ref[...] = probs[:, :num_actions].astype(o_ref.dtype)


def prepare_policy_params(w1, b1, w2, b2):
    """B-independent parameter prep; call once per parameter update.

    Returns (w1p, w2p, bias):
      w1p : (num_inputs, hidden_pad) bf16, zero-padded hidden columns
      w2p : (hidden_pad, a_pad)      bf16, zero-padded rows/columns
      bias: (1, hidden_pad + a_pad)  f32, [b1 | b2 with -1e30 on padded actions]
    """
    num_inputs, hidden = w1.shape
    num_actions = w2.shape[1]
    hidden_pad = _round_up(hidden, _LANES)
    a_pad = _round_up(max(num_actions, _LANES), _LANES)

    f32, bf16 = jnp.float32, jnp.bfloat16

    w1p = jnp.zeros((num_inputs, hidden_pad), bf16).at[:, :hidden].set(w1.astype(bf16))
    w2p = jnp.zeros((hidden_pad, a_pad), bf16).at[:hidden, :num_actions].set(w2.astype(bf16))

    b2p = jnp.full((a_pad,), -1e30, f32).at[:num_actions].set(b2.astype(f32))
    bias = jnp.zeros((1, hidden_pad + a_pad), f32)
    bias = bias.at[0, :hidden].set(b1.astype(f32))
    bias = bias.at[0, hidden_pad:].set(b2p)
    return w1p, w2p, bias


def policy_network_forward(state, w1p, w2p, bias, num_actions, *, block_b=2048):
    """state: (B, num_inputs) f32; returns (B, num_actions) f32 probabilities."""
    B, num_inputs = state.shape
    hidden_pad, a_pad = w2p.shape
    assert w1p.shape == (num_inputs, hidden_pad)
    assert bias.shape == (1, hidden_pad + a_pad)

    # Batch tiling: tiles are multiples of 8 sublanes, capped at block_b.  When
    # there is more than one 8-row tile of work, force an even grid length so
    # the "parallel" batch axis splits evenly across v7x's two TensorCores.
    b8 = _round_up(max(B, 1), _SUBLANES)
    tb_cap = max(_SUBLANES, min(_round_up(block_b, _SUBLANES), b8))
    n_tiles = _cdiv(b8, tb_cap)
    if b8 >= 2 * _SUBLANES:
        n_tiles = max(n_tiles, 2)
    if n_tiles > 1 and n_tiles % 2:
        n_tiles += 1
    tb = _round_up(_cdiv(b8, n_tiles), _SUBLANES)
    b_padded = tb * n_tiles

    state = state.astype(jnp.float32)
    if b_padded != B:
        state = jnp.pad(state, ((0, b_padded - B), (0, 0)))

    kernel = functools.partial(_policy_kernel, hidden_pad=hidden_pad,
                               num_actions=num_actions)

    flops = 2 * b_padded * (num_inputs * hidden_pad + hidden_pad * a_pad)
    bytes_accessed = (b_padded * num_inputs * 4            # state in (f32)
                      + b_padded * num_actions * 4         # probs out (narrow)
                      + w1p.size * 2 + w2p.size * 2 + bias.size * 4)
    per_step_vmem = (2 * tb * num_inputs * 4               # double-buffered state tiles
                     + 2 * tb * num_actions * 4            # double-buffered out tiles
                     + w1p.size * 2 + w2p.size * 2 + bias.size * 4
                     + 6 * tb * max(hidden_pad, a_pad) * 4)  # h/logits/exp scratch
    vmem_limit = int(min(max(per_step_vmem + (4 << 20), 16 << 20), 64 << 20))

    out = pl.pallas_call(
        kernel,
        out_shape=jax.ShapeDtypeStruct((b_padded, num_actions), jnp.float32),
        grid=(n_tiles,),
        in_specs=[
            # Full-dim (tb, num_inputs) state tile: do NOT lane-pad num_inputs
            # (would 8x input HBM traffic for no MXU benefit).
            pl.BlockSpec((tb, num_inputs), lambda i: (i, 0)),
            pl.BlockSpec((num_inputs, hidden_pad), lambda i: (0, 0)),   # VMEM-resident
            pl.BlockSpec((hidden_pad, a_pad), lambda i: (0, 0)),        # VMEM-resident
            pl.BlockSpec((1, hidden_pad + a_pad), lambda i: (0, 0)),    # VMEM-resident
        ],
        # Narrow output block (last dim == full array dim) -> 16x less writeback
        # than the padded-lane variant plus no second XLA slice pass.
        out_specs=pl.BlockSpec((tb, num_actions), lambda i: (i, 0)),
        compiler_params=pltpu.CompilerParams(
            dimension_semantics=("parallel",),
            vmem_limit_bytes=vmem_limit,
        ),
        cost_estimate=pl.CostEstimate(
            flops=int(flops),
            transcendentals=int(b_padded * a_pad),
            bytes_accessed=int(bytes_accessed),
        ),
    )(state, w1p, w2p, bias)

    return out if b_padded == B else out[:B]


def policy_network_apply(state, w1, b1, w2, b2, *, block_b=2048):
    """Convenience wrapper: prep params inline (prefer prepare_policy_params once)."""
    w1p, w2p, bias = prepare_policy_params(w1, b1, w2, b2)
    return policy_network_forward(state, w1p, w2p, bias, w2.shape[1], block_b=block_b)


def _reference(state, w1, b1, w2, b2):
    h = jnp.maximum(state @ w1 + b1, 0.0)
    return jax.nn.softmax(h @ w2 + b2, axis=1)


if __name__ == "__main__":
    # Module-consistent shapes: num_inputs=16, hidden_size=256 (module default),
    # num_actions=8.
    NUM_INPUTS, HIDDEN, NUM_ACTIONS = 16, 256, 8

    key = jax.random.PRNGKey(0)
    k_x, k_w1, k_b1, k_w2, k_b2, k_x2 = jax.random.split(key, 6)

    bound1 = 1.0 / (NUM_INPUTS ** 0.5)
    bound2 = 1.0 / (HIDDEN ** 0.5)
    w1 = jax.random.uniform(k_w1, (NUM_INPUTS, HIDDEN), jnp.float32, -bound1, bound1)
    b1 = jax.random.uniform(k_b1, (HIDDEN,), jnp.float32, -bound1, bound1)
    w2 = jax.random.uniform(k_w2, (HIDDEN, NUM_ACTIONS), jnp.float32, -bound2, bound2)
    b2 = jax.random.uniform(k_b2, (NUM_ACTIONS,), jnp.float32, -bound2, bound2)

    # Pad/cast parameters once (B-independent), reused across forward calls.
    w1p, w2p, bias = prepare_policy_params(w1, b1, w2, b2)

    # Case 1: tiny online-RL batch (B=2) -> single grid step (batch padded to 8).
    B = 2
    state = jax.random.normal(k_x, (B, NUM_INPUTS), dtype=jnp.float32)
    out = jax.block_until_ready(
        policy_network_forward(state, w1p, w2p, bias, NUM_ACTIONS))
    ref = _reference(state, w1, b1, w2, b2)
    assert out.shape == (B, NUM_ACTIONS)
    assert jnp.allclose(out, ref, atol=1e-2, rtol=1e-2)
    assert jnp.allclose(jnp.sum(out, axis=1), jnp.ones((B,)), atol=1e-4)

    # Case 2: larger, non-multiple batch with the default tile -> even 2-step
    # grid (tb=152) that load-balances across both v7x TensorCores.
    B2 = 300
    state2 = jax.random.normal(k_x2, (B2, NUM_INPUTS), dtype=jnp.float32)
    out2 = jax.block_until_ready(
        policy_network_forward(state2, w1p, w2p, bias, NUM_ACTIONS))
    ref2 = _reference(state2, w1, b1, w2, b2)
    assert out2.shape == (B2, NUM_ACTIONS)
    assert jnp.allclose(out2, ref2, atol=1e-2, rtol=1e-2)
    assert jnp.allclose(jnp.sum(out2, axis=1), jnp.ones((B2,)), atol=1e-4)

    # Case 3: small block_b to exercise a multi-step (even) pipelined grid with
    # padded trailing rows (tb=80 -> grid of 4, b_padded=320).
    out3 = jax.block_until_ready(
        policy_network_forward(state2, w1p, w2p, bias, NUM_ACTIONS, block_b=96))
    assert out3.shape == (B2, NUM_ACTIONS)
    assert jnp.allclose(out3, ref2, atol=1e-2, rtol=1e-2)
    assert jnp.allclose(jnp.sum(out3, axis=1), jnp.ones((B2,)), atol=1e-4)

    print("KERNEL_OK")
</pallas_src>

<mosaic_0001>
module attributes {stable_mosaic.version = 11 : i64} {
  func.func @_policy_kernel(%arg0: i32, %arg1: memref<8x16xf32, #tpu.memory_space<vmem>>, %arg2: memref<16x256xbf16, #tpu.memory_space<vmem>>, %arg3: memref<256x128xbf16, #tpu.memory_space<vmem>>, %arg4: memref<1x384xf32, #tpu.memory_space<vmem>>, %arg5: memref<8x8xf32, #tpu.memory_space<vmem>>) attributes {dimension_semantics = [#tpu.dimension_semantics<parallel>], iteration_bounds = array<i64: 1>, scalar_prefetch = 0 : i64, scratch_operands = 0 : i64, tpu.core_type = #tpu.core_type<tc>, window_params = [{transform_indices = @transform_0, window_bounds = array<i64: 8, 16>}, {pipeline_mode = #tpu.pipeline_mode<synchronous>, transform_indices = @transform_1, window_bounds = array<i64: 16, 256>}, {pipeline_mode = #tpu.pipeline_mode<synchronous>, transform_indices = @transform_2, window_bounds = array<i64: 256, 128>}, {pipeline_mode = #tpu.pipeline_mode<synchronous>, transform_indices = @transform_3, window_bounds = array<i64: 1, 384>}, {transform_indices = @transform_4, window_bounds = array<i64: 8, 8>}]} {
    %c0 = arith.constant 0 : index
    %c0_0 = arith.constant 0 : index
    %0 = vector.load %arg1[%c0, %c0_0] : memref<8x16xf32, #tpu.memory_space<vmem>>, vector<8x16xf32>
    %1 = arith.truncf %0 : vector<8x16xf32> to vector<8x16xbf16>
    %c0_1 = arith.constant 0 : index
    %c0_2 = arith.constant 0 : index
    %2 = vector.load %arg2[%c0_1, %c0_2] : memref<16x256xbf16, #tpu.memory_space<vmem>>, vector<16x256xbf16>
    %cst = arith.constant dense<0.000000e+00> : vector<8x256xf32>
    %3 = tpu.matmul %1, %2, %cst {dimension_numbers = #tpu.dot_dimension_numbers<[1], [0], [0], [1], [0, 0, 1, 1], [], []>} : vector<8x16xbf16>, vector<16x256xbf16>, vector<8x256xf32> -> vector<8x256xf32>
    %c0_3 = arith.constant 0 : index
    %c0_4 = arith.constant 0 : index
    %4 = vector.load %arg4[%c0_3, %c0_4] : memref<1x384xf32, #tpu.memory_space<vmem>>, vector<1x256xf32>
    %5 = vector.broadcast %4 : vector<1x256xf32> to vector<8x256xf32>
    %6 = arith.addf %3, %5 : vector<8x256xf32>
    %cst_5 = arith.constant 0.000000e+00 : f32
    %7 = vector.broadcast %cst_5 : f32 to vector<8x256xf32>
    %8 = arith.maximumf %6, %7 : vector<8x256xf32>
    %9 = arith.truncf %8 : vector<8x256xf32> to vector<8x256xbf16>
    %c0_6 = arith.constant 0 : index
    %c0_7 = arith.constant 0 : index
    %10 = vector.load %arg3[%c0_6, %c0_7] : memref<256x128xbf16, #tpu.memory_space<vmem>>, vector<256x128xbf16>
    %cst_8 = arith.constant dense<0.000000e+00> : vector<8x128xf32>
    %11 = tpu.matmul %9, %10, %cst_8 {dimension_numbers = #tpu.dot_dimension_numbers<[1], [0], [0], [1], [0, 0, 1, 1], [], []>} : vector<8x256xbf16>, vector<256x128xbf16>, vector<8x128xf32> -> vector<8x128xf32>
    %c0_9 = arith.constant 0 : index
    %c256 = arith.constant 256 : index
    %12 = vector.load %arg4[%c0_9, %c256] : memref<1x384xf32, #tpu.memory_space<vmem>>, vector<1x128xf32>
    %13 = vector.broadcast %12 : vector<1x128xf32> to vector<8x128xf32>
    %14 = arith.addf %11, %13 : vector<8x128xf32>
    %cst_10 = arith.constant dense<0xFF800000> : vector<8xf32>
    %15 = vector.multi_reduction <maximumf>, %14, %cst_10 [1] : vector<8x128xf32> to vector<8xf32>
    %16 = vector.shape_cast %15 : vector<8xf32> to vector<8x1xf32>
    %17 = vector.broadcast %16 : vector<8x1xf32> to vector<8x128xf32>
    %18 = arith.subf %14, %17 : vector<8x128xf32>
    %19 = math.exp %18 : vector<8x128xf32>
    %cst_11 = arith.constant dense<0.000000e+00> : vector<8xf32>
    %20 = vector.multi_reduction <add>, %19, %cst_11 [1] : vector<8x128xf32> to vector<8xf32>
    %21 = vector.shape_cast %20 : vector<8xf32> to vector<8x1xf32>
    %22 = vector.broadcast %21 : vector<8x1xf32> to vector<8x128xf32>
    %23 = arith.divf %19, %22 : vector<8x128xf32>
    %24 = vector.extract_strided_slice %23 {offsets = [0, 0], sizes = [8, 8], strides = [1, 1]} : vector<8x128xf32> to vector<8x8xf32>
    %c0_12 = arith.constant 0 : index
    %c0_13 = arith.constant 0 : index
    %25 = vector.load %arg5[%c0_12, %c0_13] : memref<8x8xf32, #tpu.memory_space<vmem>>, vector<8x8xf32>
    tpu.vector_store %arg5[%c0_12, %c0_13], %24 {strides = array<i32>} : memref<8x8xf32, #tpu.memory_space<vmem>>, vector<8x8xf32>,
    return
  }
  func.func @transform_0(%arg0: i32) -> (i32, i32) {
    %c0_i32 = arith.constant 0 : i32
    %c0_i32_0 = arith.constant 0 : i32
    return %arg0, %c0_i32 : i32, i32
  }
  func.func @transform_1(%arg0: i32) -> (i32, i32) {
    %c0_i32 = arith.constant 0 : i32
    %c0_i32_0 = arith.constant 0 : i32
    %c0_i32_1 = arith.constant 0 : i32
    return %c0_i32, %c0_i32_0 : i32, i32
  }
  func.func @transform_2(%arg0: i32) -> (i32, i32) {
    %c0_i32 = arith.constant 0 : i32
    %c0_i32_0 = arith.constant 0 : i32
    %c0_i32_1 = arith.constant 0 : i32
    return %c0_i32, %c0_i32_0 : i32, i32
  }
  func.func @transform_3(%arg0: i32) -> (i32, i32) {
    %c0_i32 = arith.constant 0 : i32
    %c0_i32_0 = arith.constant 0 : i32
    %c0_i32_1 = arith.constant 0 : i32
    return %c0_i32, %c0_i32_0 : i32, i32
  }
  func.func @transform_4(%arg0: i32) -> (i32, i32) {
    %c0_i32 = arith.constant 0 : i32
    %c0_i32_0 = arith.constant 0 : i32
    return %arg0, %c0_i32 : i32, i32
  }
}

</mosaic_0001>

<bundles_post_ra>
// kernel: tpu_custom_call.1
= control target key start
LH: loop header
LB: loop body
LE: loop exit
PB: predicated region body
PF: predicated region fallthrough
CT: control target
= control target key end

     0   :  { %9 = vsyncpa [#allocation3], 0  ;;  %s591_s0 = inlined_call_operand.hbm [shape: f32[8,16], index: 0, kind: input, shape index: {}]   ;;  %s592_s1 = inlined_call_operand.hbm [shape: bf16[16,256], index: 1, kind: input, shape index: {}]   ;;  %s593_s2 = inlined_call_operand.hbm [shape: bf16[256,128], index: 2, kind: input, shape index: {}]   ;;  %s594_s3 = inlined_call_operand.vmem [shape: f32[1,384], index: 3, kind: input, shape index: {}]   ;;  %s595_s4 = inlined_call_operand.hbm [shape: f32[8,8], index: 4, kind: output, shape index: {}]  }
   0x1   :  { %10 = vsyncpa [#allocation6], 0 }
   0x2   :  { %11 = vsyncpa [#allocation4], 0  ;;  %s503_s15 = smov [#allocation5]   ;;  %s409_s19 = scalar_lea.hbm %s592_s1, 256 }
   0x3   :  { %s27_s16 = sshll.u32 %s503_s15, 4  ;;  %p410_p0 = scmp.ne.s32.totalorder %s592_s1, %s409_s19  ;;  %s28_s16 = int_to_ptr.vmem [resolvable:$true] %s27_s16 }
   0x4   :  { %p413_p1 = scmp.lt.u32.totalorder %s409_s19, %s592_s1 }
   0x6   :  { %p415_p2 = pnand %p413_p1, %p410_p0 }
   0x8   :  { %418 = shalt.err (!%p415_p2)
}
   0x9   :  { %s419_s24 = scalar_lea.vmem %s28_s16, 256  ;;  %p424_p4 = scmp.lt.s32.totalorder %s28_s16, %s28_s16 }
   0xa   :  { %p420_p3 = scmp.ne.s32.totalorder %s28_s16, %s419_s24  ;;  %p425_p5 = scmp.lt.s32.totalorder %s419_s24, %s419_s24 }
   0xc   :  { %p426_p6 = por %p425_p5, %p424_p4 }
   0xe   :  { %p427_p7 = pnand %p426_p6, %p420_p3 }
  0x10   :  { %430 = shalt.err (!%p427_p7)
}
  0x11   :  { %s504_s25 = smov 128   ;;  %s505_s26 = smov 8  }
  0x12   :  { %33 = dma.hbm_to_vmem [thread:$0]  %s592_s1, 256, %s28_s16, [#allocation6], %s504_s25, %s504_s25, %s505_s26  }
  0x13   :  { %s506_s29 = smov [#allocation2]   ;;  %s507_s5 = smov [#allocation7]  }
  0x14   :  { %s18_s30 = sshll.u32 %s506_s29, 4  ;;  %s39_s6 = sshll.u32 %s507_s5, 4  ;;  %s19_s30 = int_to_ptr.vmem [resolvable:$true] %s18_s30  ;;  %s40_s6 = int_to_ptr.vmem [resolvable:$true] %s39_s6 }
  0x15   :  { %s431_s9 = scalar_lea.hbm %s591_s0, 128 }
  0x16   :  { %p432_p8 = scmp.ne.s32.totalorder %s591_s0, %s431_s9  ;;  %p435_p9 = scmp.lt.u32.totalorder %s431_s9, %s591_s0 }
  0x18   :  { %p437_p10 = pnand %p435_p9, %p432_p8 }
  0x1a   :  { %440 = shalt.err (!%p437_p10)
}
  0x1b   :  { %s441_s1 = scalar_lea.vmem %s19_s30, 128  ;;  %p446_p12 = scmp.lt.s32.totalorder %s19_s30, %s19_s30 }
  0x1c   :  { %p442_p11 = scmp.ne.s32.totalorder %s19_s30, %s441_s1  ;;  %p447_p13 = scmp.lt.s32.totalorder %s441_s1, %s441_s1 }
  0x1e   :  { %p448_p0 = por %p447_p13, %p446_p12 }
  0x20   :  { %p449_p1 = pnand %p448_p0, %p442_p11 }
  0x22   :  { %452 = shalt.err (!%p449_p1)
}
  0x23   :  { %21 = dma.hbm_to_vmem [thread:$0]  %s591_s0, 128, %s19_s30, [#allocation3]  }
  0x24   :  { %s453_s18 = scalar_lea.hbm %s593_s2, 2048 }
  0x25   :  { %p454_p2 = scmp.ne.s32.totalorder %s593_s2, %s453_s18  ;;  %p457_p3 = scmp.lt.u32.totalorder %s453_s18, %s593_s2 }
  0x27   :  { %p459_p4 = pnand %p457_p3, %p454_p2 }
  0x29   :  { %462 = shalt.err (!%p459_p4)
}
  0x2a   :  { %s463_s23 = scalar_lea.vmem %s40_s6, 2048  ;;  %p468_p6 = scmp.lt.s32.totalorder %s40_s6, %s40_s6 }
  0x2b   :  { %p464_p5 = scmp.ne.s32.totalorder %s40_s6, %s463_s23  ;;  %p469_p7 = scmp.lt.s32.totalorder %s463_s23, %s463_s23 }
  0x2d   :  { %p470_p8 = por %p469_p7, %p468_p6 }
  0x2f   :  { %p471_p9 = pnand %p470_p8, %p464_p5 }
  0x31   :  { %474 = shalt.err (!%p471_p9)
}
  0x32   :  { %s508_s0 = smov 64   ;;  %s509_s24 = smov 4  }
  0x33   :  { %45 = dma.hbm_to_vmem [thread:$0]  %s593_s2, 2048, %s40_s6, [#allocation6], %s508_s0, %s508_s0, %s509_s24  }
  0x34   :  { %497 = dma.done.wait [#allocation3], 128  }
  0x35   :  { %498 = vsyncadd [#allocation3], 4294967168 }
  0x36   :  { %499 = dma.done.wait [#allocation6], 2304  }
  0x37   :  { %500 = vsyncadd [#allocation6], 4294964992  ;;  %v510_v0 = vmov 0   ;;  %v386_v1 = vld [vmem:[#allocation5 + $0x4] ss:$8 sps:$4 sm:$0xff]   ;;  %v58_v3 = vld [vmem:[#allocation2] sm:$0xff]  ;;  %v64_v21 = vlaneseq }
  0x38   :  { %120 = vmatprep.mubr.bf16.mxu0 %v510_v0  ;;  %v388_v2 = vld [vmem:[#allocation5] ss:$8 sps:$4 sm:$0xff]   ;;  %88 = vmatprep.subr.bf16.mxu0 %v386_v1  ;;  %v59_v4 = vpack.c.bf16 %v58_v3, %v58_v3  ;;  %v389_v5 = vld [vmem:[#allocation7 + $0x40] sm:$0xff]   ;;  %vm84_vm0 = vcmask 130048   ;;  %v391_v7 = vld [vmem:[#allocation7 + $0x48] sm:$0xff]   ;;  %s511_s30 = smov [#allocation8]  }
  0x39   :  { %89 = vmatpush1.bf16.msra.mxu0 %v388_v2  ;;  %v390_v6 = vld [vmem:[#allocation7] sm:$0xff]   ;;  %355 = vmatprep.subr.bf16.mxu1 %v389_v5  ;;  %v392_v8 = vld [vmem:[#allocation7 + $0x8] sm:$0xff]   ;;  %v393_v9 = vld [vmem:[#allocation7 + $0x50] sm:$0xff]   ;;  %v65_v22 = vshrl.u32 %v64_v21, 7  ;;  %s325_s5 = sshll.u32 %s511_s30, 4  ;;  %vm317_vm1 = vcmask 64512   ;;  %s326_s5 = int_to_ptr.vmem [resolvable:$true] %s325_s5 }
  0x3a   :  { %356 = vmatpush3.bf16.msra.mxu1 %v390_v6  ;;  %v394_v10 = vld [vmem:[#allocation7 + $0x10] sm:$0xff]   ;;  %v395_v11 = vld [vmem:[#allocation7 + $0x58] sm:$0xff]   ;;  %v397_v13 = vld [vmem:[#allocation7 + $0x60] sm:$0xff]   ;;  %p480_p11 = scmp.lt.s32.totalorder %s326_s5, %s326_s5 }
  0x3b   :  { %357 = vmatprep.subr.bf16.mxu1 %v391_v7  ;;  %v396_v12 = vld [vmem:[#allocation7 + $0x18] sm:$0xff]   ;;  %v398_v14 = vld [vmem:[#allocation7 + $0x20] sm:$0xff]   ;;  %v399_v15 = vld [vmem:[#allocation7 + $0x68] sm:$0xff]   ;;  %v66_v23 = vsub.s32 0, %v65_v22  ;;  %v70_v25 = vsub.s32 1, %v65_v22 }
  0x3c   :  { %337 = vmatmul.mubr.msk.bf16.vlgmr.msra.gmra.mrb[0].mxu0 %vm84_vm0, %v59_v4  ;;  %v400_v16 = vld [vmem:[#allocation7 + $0x28] sm:$0xff]   ;;  %v401_v17 = vld [vmem:[#allocation7 + $0x70] sm:$0xff]   ;;  %v403_v19 = vld [vmem:[#allocation7 + $0x78] sm:$0xff]  }
  0x3d   :  { %v402_v18 = vld [vmem:[#allocation7 + $0x30] sm:$0xff]   ;;  %v404_v20 = vld [vmem:[#allocation7 + $0x38] sm:$0xff]   ;;  %v62_v24 = vld [vmem:[%s594_s3] sm:$0x3] }
  0x3e   :  { %358 = vmatpush3.bf16.msra.mxu1 %v392_v8  ;;  %v67_v26 = vrot.slane %v62_v24, %v66_v23  ;;  %v71_v27 = vrot.slane %v62_v24, %v70_v25  ;;  %v338_v40 = vld [vmem:[%s594_s3 + $0x2] ss:$0 sm:$0xff]  ;;  %s475_s3 = scalar_lea.vmem %s326_s5, 128 }
  0x3f   :  { %359 = vmatprep.subr.bf16.mxu1 %v393_v9  ;;  %p476_p10 = scmp.ne.s32.totalorder %s326_s5, %s475_s3  ;;  %p481_p12 = scmp.lt.s32.totalorder %s475_s3, %s475_s3 }
  0x41   :  { %p482_p13 = por %p481_p12, %p480_p11 }
  0x42   :  { %360 = vmatpush3.bf16.msra.mxu1 %v394_v10 }
  0x43   :  { %361 = vmatprep.subr.bf16.mxu1 %v395_v11  ;;  %p483_p0 = pnand %p482_p13, %p476_p10 }
  0x46   :  { %362 = vmatpush3.bf16.msra.mxu1 %v396_v12 }
  0x47   :  { %363 = vmatprep.subr.bf16.mxu1 %v397_v13 }
  0x4a   :  { %364 = vmatpush3.bf16.msra.mxu1 %v398_v14 }
  0x4b   :  { %365 = vmatprep.subr.bf16.mxu1 %v399_v15 }
  0x4e   :  { %366 = vmatpush3.bf16.msra.mxu1 %v400_v16 }
  0x4f   :  { %367 = vmatprep.subr.bf16.mxu1 %v401_v17 }
  0x52   :  { %368 = vmatpush3.bf16.msra.mxu1 %v402_v18 }
  0x53   :  { %369 = vmatprep.subr.bf16.mxu1 %v403_v19 }
  0x56   :  { %370 = vmatpush3.bf16.msra.mxu1 %v404_v20 }
 0x10f   :  { %v122_v28 = vpop.f32.mrb[0].mxu0 }
 0x110   :  { %v123_v29 = vadd.f32 %v122_v28, %v67_v26  ;;  %v124_v30 = vpop.f32.mrb[1].mxu0 }
 0x111   :  { %v125_v31 = vadd.f32 %v124_v30, %v71_v27  ;;  %v126_v32 = vpop.f32.mrb[2].mxu0 }
 0x112   :  { %v129_v33 = vmax.f32 %v123_v29, 0.0  ;;  %v127_v34 = vpop.f32.mrb[3].mxu0 }
 0x113   :  { %v130_v35 = vmax.f32 %v125_v31, 0.0 }
 0x114   :  { %v131_v37 = vpack.c.bf16 %v129_v33, %v129_v33 }
 0x115   :  { %v132_v36 = vpack.c.bf16 %v130_v35, %v130_v35 }
 0x117   :  { %300 = vmatprep.mubr.bf16.mxu1 %v132_v36 }
 0x118   :  { %301 = vmatmul.mubr.bf16.vlgmr.msra.gmra.mrb[0].mxu1 %v131_v37 }
 0x1eb   :  { %v371_v38 = vpop.f32.mrb[0].mxu1 }
 0x1ec   :  { %v372_v39 = vpop.f32.mrb[1].mxu1 }
 0x1ed   :  { %v373_v41 = vadd.f32 %v372_v39, %v371_v38  ;;  %v374_v42 = vpop.f32.mrb[2].mxu1 }
 0x1ee   :  { %v375_v43 = vpop.f32.mrb[3].mxu1 }
 0x1ef   :  { %v303_v44 = vadd.f32 %v373_v41, %v338_v40 }
 0x1f1   :  { %308 = vmax.xlane.f32.xlu0 %v303_v44 }
 0x27e   :  { %v309_v45 = vpop.xlane.xlu0 %308 }
 0x27f   :  { %v310_v46 = vsub.f32 %v303_v44, %v309_v45 }
 0x281   :  { %v311_v47 = vmul.f32 1.442695, %v310_v46 }
 0x283   :  { %405 = vpow2.f32 %v311_v47 }
 0x28d   :  { %v406_v48 = vpop.eup %405 }
 0x28e   :  { %313 = vadd.xlane.f32.xlu0 %v406_v48 }
 0x31b   :  { %v314_v49 = vpop.xlane.xlu0 %313 }
 0x31c   :  { %407 = vrcp.f32 %v314_v49 }
 0x326   :  { %v408_v50 = vpop.eup %407 }
 0x327   :  { %v316_v51 = vmul.f32 %v408_v50, %v406_v48 }
 0x329   :  { %318 = vst.msk [vmem:[#allocation8] sm:$0xff] %vm317_vm1, %v316_v51 }
 0x32a   :  { %486 = shalt.err (!%p483_p0)
}
 0x32b   :  { %s487_s8 = scalar_lea.hbm %s595_s4, 128 }
 0x32c   :  { %p488_p1 = scmp.ne.s32.totalorder %s595_s4, %s487_s8  ;;  %p491_p2 = scmp.lt.u32.totalorder %s487_s8, %s595_s4 }
 0x32e   :  { %p493_p3 = pnand %p491_p2, %p488_p1 }
 0x330   :  { %496 = shalt.err (!%p493_p3)
}
 0x331   :  { %328 = dma.vmem_to_hbm [thread:$0]  %s326_s5, 128, %s595_s4, [#allocation4]  }
 0x332   :  { %501 = dma.done.wait [#allocation4], 128  }
 0x333   :  { %502 = vsyncadd [#allocation4], 4294967168 }
 0x334   :  { %332 = vsyncpa [#allocation3], 1 }
 0x335   :  { %333 = vsyncpa [#allocation6], 1 }
 0x336   :  { %334 = vsyncpa [#allocation4], 1 }

</bundles_post_ra>
